<compile_context>
chip_gen: v6e
topology: v6e:2x2x1
jax: 0.10.0
libtpu: 0.0.40
codegen_flags: <defaults>
</compile_context>

<pallas_src>
import functools

import jax
import jax.numpy as jnp
from jax.experimental import pallas as pl
from jax.experimental.pallas import tpu as pltpu

_LANE = 128          # hardware lane width
_SUB = 8             # sublane tile (rows padded to a multiple of this)
_PACK = 2 * _LANE    # re|im lane-concatenated slab width (256)
_BLOCK_ROWS = 2048   # 2048 * 256 * 4B = 2 MiB per buffer

_VALID_BOUNDS = {"BDSS", "sigmoid", "BDT", "tanh", "UBD", None}


def _bound_mask_kernel(x_ref, o_ref, *, bound_type):
    if bound_type in ("BDSS", "sigmoid"):
        # on_reim(sigmoid): sigmoid independently on real / imag -> whole slab.
        o_ref[...] = jax.nn.sigmoid(x_ref[...])
    else:
        # "BDT"/"tanh": tanh-bounded magnitude, phase preserved:
        #     out = tanh(|M|) * (re, im) / |M|
        # Max-rescaled so the squared magnitude never overflows:
        #     m = max(|re|, |im|);  (rn, in) = (re, im)/m  in [-1, 1]
        #     |M| = m * sqrt(rn^2 + in^2);  cos/sin(phase) = rn/in * rsqrt(...)
        re = x_ref[:, :_LANE]
        im = x_ref[:, _LANE:]
        m = jnp.maximum(jnp.abs(re), jnp.abs(im))
        inv_m = jnp.where(m > 0, 1.0 / m, 0.0)
        rn = re * inv_m
        imn = im * inv_m
        sqn = rn * rn + imn * imn                 # in [1, 2] where m > 0
        inv_norm = jnp.where(sqn > 0, jax.lax.rsqrt(sqn), 0.0)
        t = jnp.tanh(m * sqn * inv_norm)          # tanh(|M|); tanh(inf) = 1 ok
        o_ref[:, :_LANE] = t * rn * inv_norm      # tanh(|M|) * cos(phase)
        o_ref[:, _LANE:] = t * imn * inv_norm     # tanh(|M|) * sin(phase)


def _choose_block_rows(rows):
    # Prefer a grid with >= 2 steps (v7x has 2 TensorCores per chip) while
    # keeping blocks <= _BLOCK_ROWS and a multiple of the 8-row sublane tile.
    target_grid = max(2, pl.cdiv(rows, _BLOCK_ROWS))
    block_rows = ((pl.cdiv(rows, target_grid) + _SUB - 1) // _SUB) * _SUB
    return max(_SUB, min(block_rows, rows))


@functools.partial(jax.jit, static_argnums=(2,))
def _bound_planes_impl(re, im, bound_type):
    orig_shape = re.shape
    n = re.size
    re = re.astype(jnp.float32)
    im = im.astype(jnp.float32)

    # Pack into one lane-dense (rows, 256) slab: re in lanes 0-127, im in
    # 128-255.  The pad/reshape/concat fuses into a single XLA pass under jit.
    pad = (-n) % (_SUB * _LANE)
    re2 = jnp.pad(re.reshape(-1), (0, pad)).reshape(-1, _LANE)
    im2 = jnp.pad(im.reshape(-1), (0, pad)).reshape(-1, _LANE)
    slab = jnp.concatenate([re2, im2], axis=1)            # (rows, 256) f32
    rows = slab.shape[0]

    block_rows = _choose_block_rows(rows)
    grid = (pl.cdiv(rows, block_rows),)
    spec = pl.BlockSpec((block_rows, _PACK), lambda i: (i, 0))

    elems = rows * _PACK
    cost = pl.CostEstimate(
        flops=12 * elems,
        transcendentals=2 * elems,          # tanh + rsqrt/recip per element
        bytes_accessed=2 * elems * 4,       # one read + one write of the slab
    )

    out = pl.pallas_call(
        functools.partial(_bound_mask_kernel, bound_type=bound_type),
        grid=grid,
        in_specs=[spec],
        out_specs=spec,
        out_shape=jax.ShapeDtypeStruct((rows, _PACK), jnp.float32),
        input_output_aliases={0: 0},        # donate the slab (jit-local temp)
        compiler_params=pltpu.CompilerParams(
            dimension_semantics=("parallel",),
            vmem_limit_bytes=32 << 20),
        cost_estimate=cost,
    )(slab)

    out_re = out[:, :_LANE].reshape(-1)[:n].reshape(orig_shape)
    out_im = out[:, _LANE:].reshape(-1)[:n].reshape(orig_shape)
    return out_re, out_im


def _check_bound(bound_type):
    if bound_type not in _VALID_BOUNDS:
        raise ValueError(f"Unknown mask bound {bound_type}")


def bound_complex_mask_reim(re, im, bound_type="tanh"):
    """Preferred path: operate directly on (real, imag) f32 planes."""
    _check_bound(bound_type)
    if bound_type in ("UBD", None):
        # Unbounded magnitude + unchanged phase == identity; skip the kernel.
        return jnp.asarray(re, jnp.float32), jnp.asarray(im, jnp.float32)
    return _bound_planes_impl(re, im, bound_type)


@functools.partial(jax.jit, static_argnums=(1,))
def _bound_complex_impl(mask, bound_type):
    re = jnp.real(mask)
    im = jnp.imag(mask)
    out_re, out_im = _bound_planes_impl(re, im, bound_type)
    return jax.lax.complex(out_re, out_im)


def bound_complex_mask(mask, bound_type="tanh"):
    """Pallas-backed equivalent of asteroid's bound_complex_mask (complex64)."""
    _check_bound(bound_type)
    if bound_type in ("UBD", None):
        return jnp.asarray(mask, dtype=jnp.complex64)
    return _bound_complex_impl(mask, bound_type)


class BoundComplexMask:
    """Module-style wrapper mirroring the PyTorch BoundComplexMask.

    Accepts either a complex64 array (like the original module) or a
    (real, imag) tuple of f32 planes, in which case it returns planes and
    skips the complex<->planes conversion entirely.
    """

    def __init__(self, bound_type):
        self.bound_type = bound_type

    def __call__(self, mask):
        if isinstance(mask, (tuple, list)):
            re, im = mask
            return bound_complex_mask_reim(re, im, self.bound_type)
        return bound_complex_mask(mask, self.bound_type)


def _reference(mask, bound_type):
    re = jnp.real(mask).astype(jnp.float32)
    im = jnp.imag(mask).astype(jnp.float32)
    if bound_type in ("BDSS", "sigmoid"):
        return jax.lax.complex(jax.nn.sigmoid(re), jax.nn.sigmoid(im))
    mag = jnp.sqrt(re * re + im * im)
    phase = jnp.arctan2(im, re)
    if bound_type in ("BDT", "tanh"):
        mag = jnp.tanh(mag)
    return jax.lax.complex(mag * jnp.cos(phase), mag * jnp.sin(phase))


if __name__ == "__main__":
    key = jax.random.PRNGKey(0)
    k_re, k_im = jax.random.split(key)

    for shape in [(2, 4, 16, 16), (3, 7, 10)]:   # padded + exact-tile cases
        re_in = jax.random.normal(k_re, shape, dtype=jnp.float32)
        im_in = jax.random.normal(k_im, shape, dtype=jnp.float32)
        mask = jax.lax.complex(re_in, im_in)

        for bt in ("tanh", "BDT", "sigmoid", "BDSS", "UBD", None):
            ref = _reference(mask, bt)

            # Complex (nn.Module-compatible) path.
            mod = BoundComplexMask(bt)
            out = jax.block_until_ready(mod(mask))
            assert out.shape == shape and out.dtype == jnp.complex64
            assert jnp.allclose(out, ref, atol=1e-5), f"complex mismatch {bt}"

            # Planes (preferred, conversion-free) path.
            ore, oim = jax.block_until_ready(mod((re_in, im_in)))
            assert jnp.allclose(ore, jnp.real(ref), atol=1e-5), f"re mismatch {bt}"
            assert jnp.allclose(oim, jnp.imag(ref), atol=1e-5), f"im mismatch {bt}"

    print("KERNEL_OK")
</pallas_src>

<mosaic_0001>
module attributes {stable_mosaic.version = 11 : i64} {
  func.func @_bound_mask_kernel(%arg0: i32, %arg1: memref<8x256xf32, #tpu.memory_space<vmem>>, %arg2: memref<8x256xf32, #tpu.memory_space<vmem>>) attributes {dimension_semantics = [#tpu.dimension_semantics<parallel>], iteration_bounds = array<i64: 2>, scalar_prefetch = 0 : i64, scratch_operands = 0 : i64, tpu.core_type = #tpu.core_type<tc>, window_params = [{transform_indices = @transform_0, window_bounds = array<i64: 8, 256>}, {transform_indices = @transform_1, window_bounds = array<i64: 8, 256>}]} {
    %c0 = arith.constant 0 : index
    %c0_0 = arith.constant 0 : index
    %0 = vector.load %arg1[%c0, %c0_0] : memref<8x256xf32, #tpu.memory_space<vmem>>, vector<8x128xf32>
    %c0_1 = arith.constant 0 : index
    %c128 = arith.constant 128 : index
    %1 = vector.load %arg1[%c0_1, %c128] : memref<8x256xf32, #tpu.memory_space<vmem>>, vector<8x128xf32>
    %2 = math.absf %0 : vector<8x128xf32>
    %3 = math.absf %1 : vector<8x128xf32>
    %4 = arith.maximumf %2, %3 : vector<8x128xf32>
    %cst = arith.constant 0.000000e+00 : f32
    %5 = vector.broadcast %cst : f32 to vector<8x128xf32>
    %6 = arith.cmpf ogt, %4, %5 : vector<8x128xf32>
    %cst_2 = arith.constant 1.000000e+00 : f32
    %7 = vector.broadcast %cst_2 : f32 to vector<8x128xf32>
    %8 = arith.divf %7, %4 : vector<8x128xf32>
    %cst_3 = arith.constant 0.000000e+00 : f32
    %9 = vector.broadcast %cst_3 : f32 to vector<8x128xf32>
    %10 = arith.select %6, %8, %9 : vector<8x128xi1>, vector<8x128xf32>
    %11 = arith.mulf %0, %10 : vector<8x128xf32>
    %12 = arith.mulf %1, %10 : vector<8x128xf32>
    %13 = arith.mulf %11, %11 : vector<8x128xf32>
    %14 = arith.mulf %12, %12 : vector<8x128xf32>
    %15 = arith.addf %13, %14 : vector<8x128xf32>
    %cst_4 = arith.constant 0.000000e+00 : f32
    %16 = vector.broadcast %cst_4 : f32 to vector<8x128xf32>
    %17 = arith.cmpf ogt, %15, %16 : vector<8x128xf32>
    %18 = math.rsqrt %15 : vector<8x128xf32>
    %cst_5 = arith.constant 0.000000e+00 : f32
    %19 = vector.broadcast %cst_5 : f32 to vector<8x128xf32>
    %20 = arith.select %17, %18, %19 : vector<8x128xi1>, vector<8x128xf32>
    %21 = arith.mulf %4, %15 : vector<8x128xf32>
    %22 = arith.mulf %21, %20 : vector<8x128xf32>
    %23 = math.tanh %22 : vector<8x128xf32>
    %24 = arith.mulf %23, %11 : vector<8x128xf32>
    %25 = arith.mulf %24, %20 : vector<8x128xf32>
    %c0_6 = arith.constant 0 : index
    %c0_7 = arith.constant 0 : index
    %26 = vector.load %arg2[%c0_6, %c0_7] : memref<8x256xf32, #tpu.memory_space<vmem>>, vector<8x128xf32>
    tpu.vector_store %arg2[%c0_6, %c0_7], %25 {strides = array<i32>} : memref<8x256xf32, #tpu.memory_space<vmem>>, vector<8x128xf32>,
    %27 = arith.mulf %23, %12 : vector<8x128xf32>
    %28 = arith.mulf %27, %20 : vector<8x128xf32>
    %c0_8 = arith.constant 0 : index
    %c128_9 = arith.constant 128 : index
    %29 = vector.load %arg2[%c0_8, %c128_9] : memref<8x256xf32, #tpu.memory_space<vmem>>, vector<8x128xf32>
    tpu.vector_store %arg2[%c0_8, %c128_9], %28 {strides = array<i32>} : memref<8x256xf32, #tpu.memory_space<vmem>>, vector<8x128xf32>,
    return
  }
  func.func @transform_0(%arg0: i32) -> (i32, i32) {
    %c0_i32 = arith.constant 0 : i32
    %c0_i32_0 = arith.constant 0 : i32
    return %arg0, %c0_i32 : i32, i32
  }
  func.func @transform_1(%arg0: i32) -> (i32, i32) {
    %c0_i32 = arith.constant 0 : i32
    %c0_i32_0 = arith.constant 0 : i32
    return %arg0, %c0_i32 : i32, i32
  }
}

</mosaic_0001>

<bundles_post_ra>
// kernel: _bound_planes_impl.1
= control target key start
LH: loop header
LB: loop body
LE: loop exit
PB: predicated region body
PF: predicated region fallthrough
CT: control target
= control target key end

     0   :  { %s243_s6 = smov 0   ;;  %s260_s0 = inlined_call_operand.vmem [shape: f32[16,256], index: 0, kind: input, shape index: {}, may-alias: {0,1}]   ;;  %s261_s1 = inlined_call_operand.vmem [shape: f32[16,256], index: 1, kind: output, shape index: {}, may-alias: {0,1}]  }
   0x1 LB: > { %s198_s7 = sadd.s32 4294967295, %s231_s6   ;;  %p202_p0 = scmp.ge.s32.totalorder %s231_s6, 1  ;;  %s231_s6 = sphi %s243_s6, %s11_s6  }
   0x2   : > { %p87_p1 = scmp.lt.s32.totalorder %s231_s6, 3 }
   0x4   : > { %p88_p2 = pnand %p202_p0, %p87_p1 }
   0x5   : > { %p107_p3 = scmp.lt.s32.totalorder (!%p88_p2), %s198_s7, 1 }
   0x6   : > { %91 = sbr.rel (%p88_p2) target bundleno = 76 (0x4c), region = 24 }
   0xb   : > { %s263_s7 = smov (!%p107_p3, %s198_s7), 1 }
   0xc   : > { %s209_s8 = sshll.u32 %s263_s7, 4 }
   0xd   : > { %s111_s11 = scalar_lea.vmem %s260_s0, %s209_s8  ;;  %s116_s14 = scalar_lea.vmem %s261_s1, %s209_s8 }
   0xe   : > { %v117_v0 = vld [vmem:[%s111_s11] sm:$0xff]  ;;  %v118_v1 = vld [vmem:[%s111_s11 + $0x8] sm:$0xff] }
   0xf   : > { %v119_v2 = vand.u32 2147483647, %v117_v0  ;;  %v120_v3 = vand.u32 2147483647, %v118_v1 }
  0x11   : > { %v121_v4 = vmax.f32.f32 %v119_v2, %v120_v3 }
  0x13   : > { %219 = vrcp.f32 %v121_v4  ;;  %vm122_vm0 = vcmp.gt.f32.partialorder %v121_v4, 0.0 }
  0x20   : > { %v220_v5 = vpop.eup %219 }
  0x21   : > { %v125_v6 = vsel %vm122_vm0, %v220_v5, 0.0 }
  0x22   : > { %v126_v7 = vmul.f32 %v125_v6, %v117_v0  ;;  %v127_v8 = vmul.f32 %v125_v6, %v118_v1 }
  0x24   : > { %v128_v9 = vmul.f32 %v126_v7, %v126_v7  ;;  %v129_v10 = vmul.f32 %v127_v8, %v127_v8 }
  0x26   : > { %v130_v11 = vadd.f32 %v129_v10, %v128_v9 }
  0x28   : > { %221 = vrsqrt.f32 %v130_v11  ;;  %vm131_vm1 = vcmp.gt.f32.partialorder %v130_v11, 0.0  ;;  %v134_v12 = vmul.f32 %v130_v11, %v121_v4 }
  0x35   : > { %v222_v13 = vpop.eup %221 }
  0x36   : > { %v133_v14 = vsel %vm131_vm1, %v222_v13, 0.0 }
  0x37   : > { %v135_v15 = vmul.f32 %v134_v12, %v133_v14 }
  0x39   : > { %223 = vtanh.f32 %v135_v15 }
  0x46   : > { %v224_v16 = vpop.eup %223 }
  0x47   : > { %v137_v17 = vmul.f32 %v224_v16, %v126_v7  ;;  %v140_v18 = vmul.f32 %v224_v16, %v127_v8 }
  0x49   : > { %v138_v19 = vmul.f32 %v137_v17, %v133_v14  ;;  %v141_v20 = vmul.f32 %v140_v18, %v133_v14 }
  0x4b   : > { %139 = vst [vmem:[%s116_s14] sm:$0xff] %v138_v19  ;;  %142 = vst [vmem:[%s116_s14 + $0x8] sm:$0xff] %v141_v20 }
  0x4c PF: > { %s11_s6 = sadd.s32 1, %s231_s6  }
  0x4d   : > { %p8_p4 = scmp.ge.s32.totalorder %s11_s6, 4  }
  0x4f   :  { %10 = sbr.rel (!%p8_p4) target bundleno = 1 (0x1), region = 54 }

</bundles_post_ra>
